<compile_context>
chip_gen: v5e
topology: v5e:2x2
jax: 0.10.0
libtpu: 0.0.40
codegen_flags: <defaults>
</compile_context>

<pallas_src>
import functools

import numpy as np
import jax
import jax.numpy as jnp
from jax import lax
from jax.experimental import pallas as pl
from jax.experimental.pallas import tpu as pltpu


# ---------------------------------------------------------------------------
# Host-side filterbank construction (matches MidiERB.__init__ / register_buffer)
# ---------------------------------------------------------------------------
def make_erb_filterbank(lowest_hz=65.40639132514966, levels=128, alpha=0.1079,
                        beta=24.7, sample_rate=16000, n_bins=257):
    """Returns fb of shape (n_bins, levels), float32 — same math as the PyTorch init."""
    def hz_to_midi(freq):
        return 12.0 * (np.log2(np.asanyarray(freq, dtype=np.float64)) - np.log2(440.0)) + 69.0

    def midi_to_hz(notes):
        return 440.0 * 2.0 ** ((np.asanyarray(notes, dtype=np.float64) - 69.0) / 12.0)

    lowest_midi = hz_to_midi(lowest_hz)
    highest_midi = hz_to_midi(sample_rate / 2)
    midi = np.linspace(lowest_midi, highest_midi, levels + 1)
    f0 = midi_to_hz(midi[:-1]).astype(np.float32)                              # (levels,)
    fft_bins = np.linspace(0.0, sample_rate // 2, n_bins).astype(np.float32)   # (n_bins,)

    bw = alpha * f0 + beta                                                      # (levels,)
    up_slope = fft_bins[:, None] * (2.0 / bw)[None, :] + 1.0 - 2.0 * f0 / bw
    down_slope = fft_bins[:, None] * (-2.0 / bw)[None, :] + 1.0 + 2.0 * f0 / bw
    fb = np.maximum(0.0, np.minimum(down_slope, up_slope)).astype(np.float32)
    return fb                                                                   # (n_bins, levels)


# ---------------------------------------------------------------------------
# Pallas kernel
# ---------------------------------------------------------------------------
def _midi_erb_kernel(fb_ref, spec_ref, out_ref):
    # fb_ref  : (n_bins, levels)    filterbank, VMEM resident (constant block index)
    # spec_ref: (1, n_bins, tile)   one batch element, one time tile
    # out_ref : (1, levels, tile)
    # out[l, t] = sum_f fb[f, l] * spec[f, t]  -> contract dim 0 of both operands.
    out_ref[0] = lax.dot_general(
        fb_ref[...], spec_ref[0],
        dimension_numbers=(((0,), (0,)), ((), ())),
        preferred_element_type=jnp.float32,
    ).astype(out_ref.dtype)


@functools.partial(jax.jit, static_argnames=("tile_t",))
def midi_erb_forward(spec, fb, *, tile_t=2048):
    """MidiERB.forward: spec (B, n_bins, T), fb (n_bins, levels) -> (B, levels, T)."""
    B, n_bins, T = spec.shape
    fb_bins, levels = fb.shape
    assert fb_bins == n_bins, "filterbank rows must match input frequency bins"

    # Time tile must be a multiple of 128 (lane dim) or equal to the full T.
    tile_t = max(128, (tile_t // 128) * 128)
    if T <= tile_t:
        tile = T                       # single tile == full array dim (always legal)
    else:
        tile = tile_t                  # multiple of 128; ragged last tile masked by Pallas
    n_t = pl.cdiv(T, tile)

    grid = (B, n_t)

    flops = 2 * B * levels * n_bins * T
    bytes_accessed = 4 * (spec.size + fb.size + B * levels * T)

    out = pl.pallas_call(
        _midi_erb_kernel,
        out_shape=jax.ShapeDtypeStruct((B, levels, T), spec.dtype),
        grid_spec=pltpu.PrefetchScalarGridSpec(
            num_scalar_prefetch=0,
            grid=grid,
            in_specs=[
                # Constant block index -> filterbank DMA'd once, stays in VMEM.
                pl.BlockSpec((n_bins, levels), lambda b, t: (0, 0)),
                pl.BlockSpec((1, n_bins, tile), lambda b, t: (b, 0, t)),
            ],
            out_specs=pl.BlockSpec((1, levels, tile), lambda b, t: (b, 0, t)),
        ),
        compiler_params=pltpu.CompilerParams(
            dimension_semantics=("parallel", "parallel")),
        cost_estimate=pl.CostEstimate(
            flops=flops, transcendentals=0, bytes_accessed=bytes_accessed),
    )(fb, spec)

    return out


# ---------------------------------------------------------------------------
# Self-test
# ---------------------------------------------------------------------------
if __name__ == "__main__":
    key = jax.random.PRNGKey(0)

    # Module defaults for the frequency axes; small batch / time for the test.
    batch, n_bins, levels, length = 2, 257, 128, 200
    spec = jax.random.uniform(key, (batch, n_bins, length), dtype=jnp.float32)

    fb = jnp.asarray(make_erb_filterbank(levels=levels, n_bins=n_bins))  # (257, 128)

    # Pure-JAX reference of the PyTorch forward:
    #   matmul(spec.transpose(1, 2), fb).transpose(1, 2)
    ref = jnp.einsum("bft,fl->blt", spec, fb)

    # Single-tile path (T <= tile_t): full time dim in one block.
    out = jax.block_until_ready(midi_erb_forward(spec, fb))
    assert out.shape == (batch, levels, length)
    np.testing.assert_allclose(np.asarray(out), np.asarray(ref), atol=1e-4, rtol=1e-4)

    # Multi-tile path with a ragged (masked) last time tile.
    out2 = jax.block_until_ready(midi_erb_forward(spec, fb, tile_t=128))
    np.testing.assert_allclose(np.asarray(out2), np.asarray(ref), atol=1e-4, rtol=1e-4)

    print("KERNEL_OK")
</pallas_src>

<mosaic_0001>
module attributes {stable_mosaic.version = 11 : i64} {
  func.func @_midi_erb_kernel(%arg0: i32, %arg1: i32, %arg2: memref<257x128xf32, #tpu.memory_space<vmem>>, %arg3: memref<1x257x200xf32, #tpu.memory_space<vmem>>, %arg4: memref<1x128x200xf32, #tpu.memory_space<vmem>>) attributes {dimension_semantics = [#tpu.dimension_semantics<parallel>, #tpu.dimension_semantics<parallel>], iteration_bounds = array<i64: 2, 1>, scalar_prefetch = 0 : i64, scratch_operands = 0 : i64, tpu.core_type = #tpu.core_type<tc>, window_params = [{pipeline_mode = #tpu.pipeline_mode<synchronous>, transform_indices = @transform_0, window_bounds = array<i64: 257, 128>}, {transform_indices = @transform_1, window_bounds = array<i64: 1, 257, 200>}, {transform_indices = @transform_2, window_bounds = array<i64: 1, 128, 200>}]} {
    %c0 = arith.constant 0 : index
    %c0_0 = arith.constant 0 : index
    %0 = vector.load %arg2[%c0, %c0_0] : memref<257x128xf32, #tpu.memory_space<vmem>>, vector<257x128xf32>
    %c0_1 = arith.constant 0 : index
    %c0_2 = arith.constant 0 : index
    %c0_3 = arith.constant 0 : index
    %1 = vector.load %arg3[%c0_1, %c0_2, %c0_3] : memref<1x257x200xf32, #tpu.memory_space<vmem>>, vector<1x257x200xf32>
    %2 = vector.shape_cast %1 : vector<1x257x200xf32> to vector<257x200xf32>
    %cst = arith.constant dense<0.000000e+00> : vector<128x200xf32>
    %3 = tpu.matmul %0, %2, %cst {dimension_numbers = #tpu.dot_dimension_numbers<[0], [0], [1], [1], [0, 1, 1, 1], [], []>} : vector<257x128xf32>, vector<257x200xf32>, vector<128x200xf32> -> vector<128x200xf32>
    %c0_4 = arith.constant 0 : index
    %c0_5 = arith.constant 0 : index
    %c0_6 = arith.constant 0 : index
    %4 = vector.load %arg4[%c0_4, %c0_5, %c0_6] : memref<1x128x200xf32, #tpu.memory_space<vmem>>, vector<1x128x200xf32>
    %5 = vector.shape_cast %4 : vector<1x128x200xf32> to vector<128x200xf32>
    %6 = vector.shape_cast %3 : vector<128x200xf32> to vector<1x128x200xf32>
    tpu.vector_store %arg4[%c0_4, %c0_5, %c0_6], %6 {strides = array<i32>} : memref<1x128x200xf32, #tpu.memory_space<vmem>>, vector<1x128x200xf32>,
    return
  }
  func.func @transform_0(%arg0: i32, %arg1: i32) -> (i32, i32) {
    %c0_i32 = arith.constant 0 : i32
    %c0_i32_0 = arith.constant 0 : i32
    %c0_i32_1 = arith.constant 0 : i32
    return %c0_i32, %c0_i32_0 : i32, i32
  }
  func.func @transform_1(%arg0: i32, %arg1: i32) -> (i32, i32, i32) {
    %c0_i32 = arith.constant 0 : i32
    %c0_i32_0 = arith.constant 0 : i32
    return %arg0, %c0_i32, %arg1 : i32, i32, i32
  }
  func.func @transform_2(%arg0: i32, %arg1: i32) -> (i32, i32, i32) {
    %c0_i32 = arith.constant 0 : i32
    %c0_i32_0 = arith.constant 0 : i32
    return %arg0, %c0_i32, %arg1 : i32, i32, i32
  }
}

</mosaic_0001>

<bundles_post_ra>
// kernel: midi_erb_forward.1
= control target key start
LH: loop header
LB: loop body
LE: loop exit
PB: predicated region body
PF: predicated region fallthrough
CT: control target
= control target key end

     0   :  { %s1161_s9 = smov 0   ;;  %s1163_s10 = smov 0   ;;  %s1591_s0 = inlined_call_operand.vmem [shape: f32[257,128], index: 0, kind: input, shape index: {}]   ;;  %s1592_s1 = inlined_call_operand.vmem [shape: f32[2,257,200], index: 1, kind: input, shape index: {}]   ;;  %s1593_s2 = inlined_call_operand.vmem [shape: f32[2,128,200], index: 2, kind: output, shape index: {}]  }
   0x1   :  { %s1165_s11 = smov 0  }
   0x2 LB: > { %s24_s12 = sadd.s32 1, %s1138_s10  ;;  %p948_p0 = scmp.ge.s32.totalorder %s1142_s11, 1  ;;  %s1142_s11 = sphi %s1165_s11, %s12_s11   ;;  %s1138_s10 = sphi %s1163_s10, %s1595_s10   ;;  %s1134_s9 = sphi %s1161_s9, %s1594_s9  }
   0x3   : > { %p26_p1 = scmp.ge.s32.totalorder %s24_s12, 2  ;;  %p133_p2 = scmp.lt.s32.totalorder %s1142_s11, 3 }
   0x5   : > { %s1597_s12 = smov (%p26_p1, %s24_s12), 0  ;;  %p134_p3 = pnand %p948_p0, %p133_p2 }
   0x6   : > { %p164_p4 = scmp.lt.s32.totalorder (!%p134_p3), %s1134_s9, 1 }
   0x7   : > { %137 = sbr.rel (%p134_p3) target bundleno = 611 (0x263), region = 28 }
   0xc   : > { %v183_v0 = vld [vmem:[%s1591_s0] sm:$0xff]  ;;  %v184_v1 = vld [vmem:[%s1591_s0 + $0x8] sm:$0xff]  ;;  %v185_v3 = vld [vmem:[%s1591_s0 + $0x10] sm:$0xff]  ;;  %s1599_s9 = smov (!%p164_p4, %s1134_s9), 1  ;;  %vm427_vm0 = vcmask 1040384   ;;  %vm378_vm1 = vcmask 7168  }
   0xd   : > { %282 = vxpose.xlu0.b32.start [1/16] %v183_v0, 128  ;;  %v215_v2 = vld [vmem:[%s1591_s0 + $0x100] sm:$0x1]  ;;  %v186_v4 = vld [vmem:[%s1591_s0 + $0x18] sm:$0xff]  ;;  %v188_v6 = vld [vmem:[%s1591_s0 + $0x28] sm:$0xff]  ;;  %s1094_s13 = smul.u32 528, %s1599_s9  ;;  %vm825_vm2 = vcmask 588800  }
   0xe   : > { %346 = vxpose.xlu1.b32.start.end [1/1] (short) %v215_v2, 128  ;;  %v187_v5 = vld [vmem:[%s1591_s0 + $0x20] sm:$0xff]  ;;  %v189_v7 = vld [vmem:[%s1591_s0 + $0x30] sm:$0xff]  ;;  %v190_v8 = vld [vmem:[%s1591_s0 + $0x38] sm:$0xff] }
   0xf   : > { %v191_v9 = vld [vmem:[%s1591_s0 + $0x40] sm:$0xff]  ;;  %v192_v10 = vld [vmem:[%s1591_s0 + $0x48] sm:$0xff]  ;;  %v193_v11 = vld [vmem:[%s1591_s0 + $0x50] sm:$0xff]  ;;  %s1228_s18 = scalar_lea.vmem %s1592_s1, %s1094_s13 }
  0x10   : > { %v194_v12 = vld [vmem:[%s1591_s0 + $0x58] sm:$0xff]  ;;  %v246_v13 = vld [vmem:[%s1228_s18 + $0xf0] sm:$0xff]  ;;  %v244_v14 = vld [vmem:[%s1228_s18 + $0xe0] sm:$0xff] }
  0x11   : > { %434 = vmatpush.msra.mxu0 %v246_v13  ;;  %989 = vmatpush.msra.mxu1 %v246_v13  ;;  %v242_v15 = vld [vmem:[%s1228_s18 + $0xd0] sm:$0xff]  ;;  %v240_v16 = vld [vmem:[%s1228_s18 + $0xc0] sm:$0xff]  ;;  %v196_v22 = vld [vmem:[%s1591_s0 + $0x68] sm:$0xff] }
  0x12   : > { %990 = vmatpush.msra.mxu3 %v246_v13  ;;  %v195_v17 = vld [vmem:[%s1591_s0 + $0x60] sm:$0xff]  ;;  %v238_v18 = vld [vmem:[%s1228_s18 + $0xb0] sm:$0xff]  ;;  %v198_v31 = vld [vmem:[%s1591_s0 + $0x78] sm:$0xff] }
  0x13   : > { %435 = vmatpush.msra.mxu0 %v244_v14  ;;  %991 = vmatpush.msra.mxu1 %v244_v14  ;;  %v236_v19 = vld [vmem:[%s1228_s18 + $0xa0] sm:$0xff]  ;;  %v234_v20 = vld [vmem:[%s1228_s18 + $0x90] sm:$0xff]  ;;  %v214_v38 = vld [vmem:[%s1591_s0 + $0xf8] sm:$0xff] }
  0x14   : > { %992 = vmatpush.msra.mxu3 %v244_v14  ;;  %v232_v21 = vld [vmem:[%s1228_s18 + $0x80] sm:$0xff]  ;;  %v230_v23 = vld [vmem:[%s1228_s18 + $0x70] sm:$0xff]  ;;  %v212_v41 = vld [vmem:[%s1591_s0 + $0xe8] sm:$0xff] }
  0x15   : > { %283 = vxpose.xlu0.b32.cont [2/16] %v184_v1, 128  ;;  %436 = vmatpush.msra.mxu0 %v242_v15  ;;  %v228_v24 = vld [vmem:[%s1228_s18 + $0x60] sm:$0xff]  ;;  %v226_v25 = vld [vmem:[%s1228_s18 + $0x50] sm:$0xff]  ;;  %v281_v43 = vld [vmem:[%s1228_s18 + $0x208] sm:$0x1] }
  0x16   : > { %993 = vmatpush.msra.mxu1 %v242_v15  ;;  %994 = vmatpush.msra.mxu3 %v242_v15  ;;  %v224_v26 = vld [vmem:[%s1228_s18 + $0x40] sm:$0xff]  ;;  %v197_v27 = vld [vmem:[%s1591_s0 + $0x70] sm:$0xff]  ;;  %v210_v45 = vld [vmem:[%s1591_s0 + $0xd8] sm:$0xff] }
  0x17   : > { %437 = vmatpush.msra.mxu0 %v240_v16  ;;  %v222_v28 = vld [vmem:[%s1228_s18 + $0x30] sm:$0xff]  ;;  %v220_v29 = vld [vmem:[%s1228_s18 + $0x20] sm:$0xff]  ;;  %v208_v48 = vld [vmem:[%s1591_s0 + $0xc8] sm:$0xff] }
  0x18   : > { %995 = vmatpush.msra.mxu1 %v240_v16  ;;  %996 = vmatpush.msra.mxu3 %v240_v16  ;;  %v218_v30 = vld [vmem:[%s1228_s18 + $0x10] sm:$0xff]  ;;  %v216_v32 = vld [vmem:[%s1228_s18] sm:$0xff]  ;;  %v206_v51 = vld [vmem:[%s1591_s0 + $0xb8] sm:$0xff] }
  0x19   : > { %438 = vmatpush.msra.mxu0 %v238_v18  ;;  %v280_v36 = vld [vmem:[%s1228_s18 + $0x200] sm:$0x1]  ;;  %v213_v39 = vld [vmem:[%s1591_s0 + $0xf0] sm:$0xff]  ;;  %v204_v54 = vld [vmem:[%s1591_s0 + $0xa8] sm:$0xff] }
  0x1a   : > { %997 = vmatpush.msra.mxu1 %v238_v18  ;;  %998 = vmatpush.msra.mxu3 %v238_v18  ;;  %v211_v42 = vld [vmem:[%s1591_s0 + $0xe0] sm:$0xff]  ;;  %v209_v46 = vld [vmem:[%s1591_s0 + $0xd0] sm:$0xff]  ;;  %v202_v57 = vld [vmem:[%s1591_s0 + $0x98] sm:$0xff] }
  0x1b   : > { %439 = vmatpush.msra.mxu0 %v236_v19  ;;  %952 = vmatpush.msk.msra.mxu2 %vm427_vm0, %v280_v36  ;;  %v207_v49 = vld [vmem:[%s1591_s0 + $0xc0] sm:$0xff]  ;;  %v205_v52 = vld [vmem:[%s1591_s0 + $0xb0] sm:$0xff]  ;;  %v200_v60 = vld [vmem:[%s1591_s0 + $0x88] sm:$0xff] }
  0x1c   : > { %999 = vmatpush.msra.mxu1 %v236_v19  ;;  %1000 = vmatpush.msra.mxu3 %v236_v19  ;;  %v203_v55 = vld [vmem:[%s1591_s0 + $0xa0] sm:$0xff]  ;;  %v201_v58 = vld [vmem:[%s1591_s0 + $0x90] sm:$0xff] }
  0x1d   : > { %284 = vxpose.xlu0.b32.cont [3/16] %v185_v3, 128  ;;  %440 = vmatpush.msra.mxu0 %v234_v20  ;;  %v199_v61 = vld [vmem:[%s1591_s0 + $0x80] sm:$0xff]  ;;  %v278_v0 = vld [vmem:[%s1228_s18 + $0x1f0] sm:$0xff] }
  0x1e   : > { %1001 = vmatpush.msra.mxu1 %v234_v20  ;;  %1002 = vmatpush.msra.mxu3 %v234_v20  ;;  %v276_v2 = vld [vmem:[%s1228_s18 + $0x1e0] sm:$0xff]  ;;  %v262_v14 = vld [vmem:[%s1228_s18 + $0x170] sm:$0xff] }
  0x1f   : > { %441 = vmatpush.msra.mxu0 %v232_v21  ;;  %1061 = vmatpush.lsf.msrb.mxu2 %v214_v38  ;;  %v264_v13 = vld [vmem:[%s1228_s18 + $0x180] sm:$0xff]  ;;  %v258_v18 = vld [vmem:[%s1228_s18 + $0x150] sm:$0xff] }
  0x20   : > { %1003 = vmatpush.msra.mxu1 %v232_v21  ;;  %1004 = vmatpush.msra.mxu3 %v232_v21  ;;  %v260_v16 = vld [vmem:[%s1228_s18 + $0x160] sm:$0xff]  ;;  %v254_v21 = vld [vmem:[%s1228_s18 + $0x130] sm:$0xff] }
  0x21   : > { %442 = vmatpush.msra.mxu0 %v230_v23  ;;  %1062 = vmatpush.lsf.msrb.mxu2 %v213_v39  ;;  %v256_v19 = vld [vmem:[%s1228_s18 + $0x140] sm:$0xff] }
  0x22   : > { %1005 = vmatpush.msra.mxu1 %v230_v23  ;;  %1006 = vmatpush.msra.mxu3 %v230_v23  ;;  %v273_v23 = vld [vmem:[%s1228_s18 + $0x1c8] sm:$0xff] }
  0x23   : > { %443 = vmatpush.msra.mxu0 %v228_v24  ;;  %1063 = vmatpush.lsf.msrb.mxu2 %v212_v41 }
  0x24   : > { %1007 = vmatpush.msra.mxu1 %v228_v24  ;;  %1008 = vmatpush.msra.mxu3 %v228_v24  ;;  %v252_v24 = vld [vmem:[%s1228_s18 + $0x120] sm:$0xff] }
  0x25   : > { %285 = vxpose.xlu0.b32.cont [4/16] %v186_v4, 128  ;;  %444 = vmatpush.msra.mxu0 %v226_v25  ;;  %v274_v4 = vld [vmem:[%s1228_s18 + $0x1d0] sm:$0xff] }
  0x26   : > { %1009 = vmatpush.msra.mxu1 %v226_v25  ;;  %1010 = vmatpush.msra.mxu3 %v226_v25  ;;  %v271_v25 = vld [vmem:[%s1228_s18 + $0x1b8] sm:$0xff] }
  0x27   : > { %445 = vmatpush.msra.mxu0 %v224_v26  ;;  %1064 = vmatpush.lsf.msrb.mxu2 %v211_v42 }
  0x28   : > { %1011 = vmatpush.msra.mxu1 %v224_v26  ;;  %1012 = vmatpush.msra.mxu3 %v224_v26  ;;  %v250_v26 = vld [vmem:[%s1228_s18 + $0x110] sm:$0xff] }
  0x29   : > { %446 = vmatpush.msra.mxu0 %v222_v28  ;;  %1065 = vmatpush.lsf.msrb.mxu2 %v210_v45 }
  0x2a   : > { %1013 = vmatpush.msra.mxu1 %v222_v28  ;;  %1014 = vmatpush.msra.mxu3 %v222_v28 }
  0x2b   : > { %447 = vmatpush.msra.mxu0 %v220_v29  ;;  %1066 = vmatpush.lsf.msrb.mxu2 %v209_v46 }
  0x2c   : > { %1015 = vmatpush.msra.mxu1 %v220_v29  ;;  %1016 = vmatpush.msra.mxu3 %v220_v29 }
  0x2d   : > { %286 = vxpose.xlu0.b32.cont [5/16] %v187_v5, 128  ;;  %448 = vmatpush.msra.mxu0 %v218_v30  ;;  %v272_v5 = vld [vmem:[%s1228_s18 + $0x1c0] sm:$0xff] }
  0x2e   : > { %1017 = vmatpush.msra.mxu1 %v218_v30  ;;  %1018 = vmatpush.msra.mxu3 %v218_v30  ;;  %v269_v30 = vld [vmem:[%s1228_s18 + $0x1a8] sm:$0xff] }
  0x2f   : > { %449 = vmatpush.msra.mxu0 %v216_v32  ;;  %1067 = vmatpush.lsf.msrb.mxu2 %v208_v48 }
  0x30   : > { %1019 = vmatpush.msra.mxu1 %v216_v32  ;;  %1020 = vmatpush.msra.mxu3 %v216_v32 }
  0x31   : > { %969 = vmatpush.msk.msrb.mxu0 %vm427_vm0, %v281_v43  ;;  %1068 = vmatpush.lsf.msrb.mxu2 %v207_v49  ;;  %v259_v43 = vld [vmem:[%s1228_s18 + $0x158] sm:$0xff] }
  0x32   : > { %1021 = vmatpush.msk.msrb.mxu3 %vm427_vm0, %v280_v36  ;;  %1025 = vmatpush.lsf.msrb.mxu1 %v214_v38  ;;  %v263_v38 = vld [vmem:[%s1228_s18 + $0x178] sm:$0xff] }
  0x33   : > { %1069 = vmatpush.lsf.msrb.mxu2 %v206_v51 }
  0x34   : > { %1026 = vmatpush.lsf.msrb.mxu1 %v213_v39  ;;  %v261_v39 = vld [vmem:[%s1228_s18 + $0x168] sm:$0xff] }
  0x35   : > { %287 = vxpose.xlu0.b32.cont [6/16] %v188_v6, 128  ;;  %1070 = vmatpush.lsf.msrb.mxu2 %v205_v52  ;;  %v270_v6 = vld [vmem:[%s1228_s18 + $0x1b0] sm:$0xff] }
  0x36   : > { %1027 = vmatpush.lsf.msrb.mxu1 %v212_v41 }
  0x37   : > { %1071 = vmatpush.lsf.msrb.mxu2 %v204_v54 }
  0x38   : > { %1028 = vmatpush.lsf.msrb.mxu1 %v211_v42  ;;  %v245_v42 = vld [vmem:[%s1228_s18 + $0xe8] sm:$0xff] }
  0x39   : > { %1072 = vmatpush.lsf.msrb.mxu2 %v203_v55 }
  0x3a   : > { %1029 = vmatpush.lsf.msrb.mxu1 %v210_v45  ;;  %v243_v45 = vld [vmem:[%s1228_s18 + $0xd8] sm:$0xff] }
  0x3b   : > { %1073 = vmatpush.lsf.msrb.mxu2 %v202_v57 }
  0x3c   : > { %1030 = vmatpush.lsf.msrb.mxu1 %v209_v46 }
  0x3d   : > { %288 = vxpose.xlu0.b32.cont [7/16] %v189_v7, 128  ;;  %1074 = vmatpush.lsf.msrb.mxu2 %v201_v58 }
  0x3e   : > { %1031 = vmatpush.lsf.msrb.mxu1 %v208_v48  ;;  %v257_v48 = vld [vmem:[%s1228_s18 + $0x148] sm:$0xff] }
  0x3f   : > { %1075 = vmatpush.lsf.msrb.mxu2 %v200_v60 }
  0x40   : > { %1032 = vmatpush.lsf.msrb.mxu1 %v207_v49  ;;  %v239_v49 = vld [vmem:[%s1228_s18 + $0xb8] sm:$0xff] }
  0x41   : > { %1076 = vmatpush.lsf.msrb.mxu2 %v199_v61 }
  0x42   : > { %1033 = vmatpush.lsf.msrb.mxu1 %v206_v51 }
  0x44   : > { %1034 = vmatpush.lsf.msrb.mxu1 %v205_v52  ;;  %v237_v52 = vld [vmem:[%s1228_s18 + $0xa8] sm:$0xff] }
  0x45   : > { %289 = vxpose.xlu0.b32.cont [8/16] %v190_v8, 128  ;;  %v268_v8 = vld [vmem:[%s1228_s18 + $0x1a0] sm:$0xff] }
  0x46   : > { %1035 = vmatpush.lsf.msrb.mxu1 %v204_v54  ;;  %v235_v54 = vld [vmem:[%s1228_s18 + $0x98] sm:$0xff] }
  0x48   : > { %1036 = vmatpush.lsf.msrb.mxu1 %v203_v55  ;;  %v233_v55 = vld [vmem:[%s1228_s18 + $0x88] sm:$0xff] }
  0x4a   : > { %1037 = vmatpush.lsf.msrb.mxu1 %v202_v57 }
  0x4c   : > { %1038 = vmatpush.lsf.msrb.mxu1 %v201_v58  ;;  %v231_v58 = vld [vmem:[%s1228_s18 + $0x78] sm:$0xff] }
  0x4d   : > { %290 = vxpose.xlu0.b32.cont [9/16] %v191_v9, 128  ;;  %v279_v9 = vld [vmem:[%s1228_s18 + $0x1f8] sm:$0xff] }
  0x4e   : > { %1039 = vmatpush.lsf.msrb.mxu1 %v200_v60  ;;  %v253_v60 = vld [vmem:[%s1228_s18 + $0x128] sm:$0xff] }
  0x50   : > { %1040 = vmatpush.lsf.msrb.mxu1 %v199_v61  ;;  %v227_v61 = vld [vmem:[%s1228_s18 + $0x58] sm:$0xff] }
  0x51   : > { %1041 = vllmr.16.mxu1 }
  0x55   : > { %291 = vxpose.xlu0.b32.cont [10/16] %v192_v10, 128  ;;  %v277_v10 = vld [vmem:[%s1228_s18 + $0x1e8] sm:$0xff] }
  0x5d   : > { %292 = vxpose.xlu0.b32.cont [11/16] %v193_v11, 128  ;;  %v266_v11 = vld [vmem:[%s1228_s18 + $0x190] sm:$0xff] }
  0x65   : > { %293 = vxpose.xlu0.b32.cont [12/16] %v194_v12, 128 }
  0x6d   : > { %294 = vxpose.xlu0.b32.cont [13/16] %v195_v17, 128  ;;  %v275_v17 = vld [vmem:[%s1228_s18 + $0x1d8] sm:$0xff] }
  0x75   : > { %295 = vxpose.xlu0.b32.cont [14/16] %v196_v22, 128 }
  0x7d   : > { %296 = vxpose.xlu0.b32.cont [15/16] %v197_v27, 128  ;;  %v248_v27 = vld [vmem:[%s1228_s18 + $0x100] sm:$0xff] }
  0x85   : > { %297 = vxpose.xlu0.b32.end [16/16] %v198_v31, 128  ;;  %v267_v31 = vld [vmem:[%s1228_s18 + $0x198] sm:$0xff] }
  0xb1   : > { %v1258_v33 = vpop.trf.xlu0 }
  0xb2   : > { %450 = vmatmul.f32.vlgmr.msra.gmra.mxu0 %v1258_v33  ;;  %v1264_v35 = vpop.trf.xlu1 }
  0xb3   : > { %953 = vmatmul.msk.f32.vlgmr.msra.gmra.mxu2 %vm378_vm1, %v1264_v35 }
  0xb4   : > { %694 = vmatpush.msra.mxu2 %v279_v9 }
  0xb6   : > { %695 = vmatpush.msra.mxu2 %v277_v10 }
  0xb8   : > { %696 = vmatpush.msra.mxu2 %v275_v17 }
  0xb9   : > { %v1261_v34 = vpop.trf.xlu0 }
  0xba   : > { %453 = vmatmul.f32.gmra.mxu0 %v1261_v34  ;;  %v1278_v40 = vpop.trf.xlu1  ;;  %697 = vmatpush.msra.mxu2 %v273_v23 }
  0xbb   : > { %954 = vmatmul.msk.f32.gmra.mxu2 %vm378_vm1, %v1278_v40 }
  0xbc   : > { %698 = vmatpush.msra.mxu2 %v271_v25 }
  0xbe   : > { %699 = vmatpush.msra.mxu2 %v269_v30 }
  0xc0   : > { %700 = vmatpush.msra.mxu2 %v267_v31 }
  0xc1   : > { %v1267_v37 = vpop.trf.xlu0 }
  0xc2   : > { %456 = vmatmul.f32.gmra.mxu0 %v1267_v37  ;;  %v1299_v47 = vpop.trf.xlu1 }
  0xc3   : > { %955 = vmatmul.msk.f32.gmra.mxu2 %vm378_vm1, %v1299_v47 }
  0xc9   : > { %v1289_v44 = vpop.trf.xlu0 }
  0xca   : > { %459 = vmatmul.f32.gmra.mxu0 %v1289_v44  ;;  %v1318_v53 = vpop.trf.xlu1 }
  0xcb   : > { %956 = vmatmul.msk.f32.gmra.mxu2 %vm378_vm1, %v1318_v53 }
  0xd1   : > { %v1309_v50 = vpop.trf.xlu0 }
  0xd2   : > { %462 = vmatmul.f32.gmra.mxu0 %v1309_v50  ;;  %v1337_v59 = vpop.trf.xlu1 }
  0xd3   : > { %957 = vmatmul.msk.f32.gmra.mxu2 %vm378_vm1, %v1337_v59 }
  0xd9   : > { %v1328_v56 = vpop.trf.xlu0 }
  0xda   : > { %465 = vmatmul.f32.gmra.mxu0 %v1328_v56  ;;  %v1350_v63 = vpop.trf.xlu1  ;;  %1077 = vllmr.16.mxu2 }
  0xdb   : > { %958 = vmatmul.msk.f32.gmra.mxu2 %vm378_vm1, %v1350_v63 }
  0xe1   : > { %v1347_v62 = vpop.trf.xlu0 }
  0xe2   : > { %468 = vmatmul.f32.gmra.mxu0 %v1347_v62  ;;  %v1363_v3 = vpop.trf.xlu1 }
  0xe3   : > { %959 = vmatmul.msk.f32.gmra.mxu2 %vm378_vm1, %v1363_v3 }
  0xe9   : > { %v1355_v1 = vpop.trf.xlu0 }
  0xea   : > { %471 = vmatmul.f32.vlgmr.msra.gmra.mxu1 %v1355_v1  ;;  %970 = vmatmul.msk.f32.vlgmr.msrb.gmra.mxu0 %vm378_vm1, %v1264_v35  ;;  %v369_v12 = vpop.trf.xlu1  ;;  %v265_v35 = vld [vmem:[%s1228_s18 + $0x188] sm:$0xff] }
  0xeb   : > { %499 = vmatpush.msra.mxu1 %v278_v0  ;;  %960 = vmatmul.msk.f32.gmra.mxu2 %vm378_vm1, %v369_v12  ;;  %v251_v0 = vld [vmem:[%s1228_s18 + $0x118] sm:$0xff] }
  0xec   : > { %701 = vmatpush.msra.mxu2 %v265_v35 }
  0xed   : > { %500 = vmatpush.msra.mxu1 %v276_v2  ;;  %v223_v2 = vld [vmem:[%s1228_s18 + $0x38] sm:$0xff] }
  0xee   : > { %702 = vmatpush.msra.mxu2 %v263_v38 }
  0xef   : > { %501 = vmatpush.msra.mxu1 %v274_v4  ;;  %v221_v4 = vld [vmem:[%s1228_s18 + $0x28] sm:$0xff] }
  0xf0   : > { %703 = vmatpush.msra.mxu2 %v261_v39 }
  0xf1   : > { %v1368_v7 = vpop.trf.xlu0  ;;  %502 = vmatpush.msra.mxu1 %v272_v5  ;;  %v249_v5 = vld [vmem:[%s1228_s18 + $0x108] sm:$0xff] }
  0xf2   : > { %474 = vmatmul.f32.gmra.mxu1 %v1368_v7  ;;  %971 = vmatmul.msk.f32.gmra.mxu0 %vm378_vm1, %v1278_v40  ;;  %v370_v20 = vpop.trf.xlu1  ;;  %v247_v40 = vld [vmem:[%s1228_s18 + $0xf8] sm:$0xff] }
  0xf3   : > { %503 = vmatpush.msra.mxu1 %v270_v6  ;;  %961 = vmatmul.msk.f32.gmra.mxu2 %vm378_vm1, %v370_v20  ;;  %v219_v6 = vld [vmem:[%s1228_s18 + $0x18] sm:$0xff] }
  0xf4   : > { %704 = vmatpush.msra.mxu2 %v259_v43 }
  0xf5   : > { %504 = vmatpush.msra.mxu1 %v268_v8  ;;  %v217_v8 = vld [vmem:[%s1228_s18 + $0x8] sm:$0xff] }
  0xf6   : > { %705 = vmatpush.msra.mxu2 %v257_v48 }
  0xf7   : > { %505 = vmatpush.msra.mxu1 %v266_v11 }
  0xf9   : > { %v1381_v15 = vpop.trf.xlu0  ;;  %506 = vmatpush.msra.mxu1 %v264_v13 }
  0xfa   : > { %477 = vmatmul.f32.gmra.mxu1 %v1381_v15  ;;  %972 = vmatmul.msk.f32.gmra.mxu0 %vm378_vm1, %v1299_v47  ;;  %v371_v29 = vpop.trf.xlu1  ;;  %v241_v47 = vld [vmem:[%s1228_s18 + $0xc8] sm:$0xff] }
  0xfb   : > { %507 = vmatpush.msra.mxu1 %v262_v14  ;;  %962 = vmatmul.msk.f32.gmra.mxu2 %vm378_vm1, %v371_v29 }
  0xfd   : > { %508 = vmatpush.msra.mxu1 %v260_v16 }
  0xff   : > { %509 = vmatpush.msra.mxu1 %v258_v18 }
 0x101   : > { %v1392_v22 = vpop.trf.xlu0  ;;  %510 = vmatpush.msra.mxu1 %v256_v19 }
 0x102   : > { %480 = vmatmul.f32.gmra.mxu1 %v1392_v22  ;;  %973 = vmatmul.msk.f32.gmra.mxu0 %vm378_vm1, %v1318_v53  ;;  %v372_v46 = vpop.trf.xlu1  ;;  %v255_v53 = vld [vmem:[%s1228_s18 + $0x138] sm:$0xff] }
 0x103   : > { %511 = vmatpush.msra.mxu1 %v254_v21  ;;  %706 = vmatpush.msra.mxu2 %v255_v53 }
 0x105   : > { %512 = vmatpush.msra.mxu1 %v252_v24  ;;  %707 = vmatpush.msra.mxu2 %v253_v60 }
 0x107   : > { %513 = vmatpush.msra.mxu1 %v250_v26  ;;  %708 = vmatpush.msra.mxu2 %v251_v0 }
 0x109   : > { %v1403_v28 = vpop.trf.xlu0  ;;  %514 = vmatpush.msra.mxu1 %v248_v27  ;;  %709 = vmatpush.msra.mxu2 %v249_v5 }
 0x10a   : > { %483 = vmatmul.f32.gmra.mxu1 %v1403_v28  ;;  %974 = vmatmul.msk.f32.gmra.mxu0 %vm378_vm1, %v1337_v59  ;;  %v373_v57 = vpop.trf.xlu1  ;;  %v229_v59 = vld [vmem:[%s1228_s18 + $0x68] sm:$0xff] }
 0x10b   : > { %1078 = vmatmul.lmr.bf16.vlgmr.msra.gmra.16.mxu2 }
 0x111   : > { %v1411_v32 = vpop.trf.xlu0 }
 0x112   : > { %486 = vmatmul.f32.gmra.mxu1 %v1411_v32  ;;  %975 = vmatmul.msk.f32.gmra.mxu0 %vm378_vm1, %v1350_v63  ;;  %v225_v63 = vld [vmem:[%s1228_s18 + $0x48] sm:$0xff]  ;;  %s988_s18 = sshll.u32 %s1599_s9, 8 }
 0x113   : > { %1079 = vmatmul.lmr.bf16.gmra.16.mxu2  ;;  %s1493_s14 = scalar_lea.vmem %s1593_s2, %s988_s18 }
 0x119   : > { %v1417_v36 = vpop.trf.xlu0 }
 0x11a   : > { %489 = vmatmul.f32.gmra.mxu1 %v1417_v36  ;;  %976 = vmatmul.msk.f32.gmra.mxu0 %vm378_vm1, %v1363_v3  ;;  %v374_v3 = vpop.trf.xlu1 }
 0x11b   : > { %1080 = vmatmul.lmr.bf16.gmra.16.mxu2 }
 0x121   : > { %v1425_v41 = vpop.trf.xlu0 }
 0x122   : > { %492 = vmatmul.f32.vlgmr.msra.gmra.mxu3 %v1425_v41  ;;  %1042 = vmatmul.lmr.bf16.vlgmr.msra.gmra.16.mxu1  ;;  %v375_v9 = vpop.trf.xlu1 }
 0x123   : > { %977 = vmatmul.msk.f32.gmra.mxu0 %vm378_vm1, %v369_v12  ;;  %629 = vmatpush.msra.mxu3 %v247_v40 }
 0x124   : > { %1081 = vmatmul.lmr.bf16.gmra.16.mxu2 }
 0x125   : > { %630 = vmatpush.msra.mxu3 %v245_v42 }
 0x127   : > { %631 = vmatpush.msra.mxu3 %v243_v45 }
 0x129   : > { %v1435_v51 = vpop.trf.xlu0  ;;  %632 = vmatpush.msra.mxu3 %v241_v47 }
 0x12a   : > { %495 = vmatmul.f32.gmra.mxu3 %v1435_v51  ;;  %1043 = vmatmul.lmr.bf16.gmra.16.mxu1  ;;  %v376_v10 = vpop.trf.xlu1 }
 0x12b   : > { %978 = vmatmul.msk.f32.gmra.mxu0 %vm378_vm1, %v370_v20  ;;  %633 = vmatpush.msra.mxu3 %v239_v49 }
 0x12c   : > { %1082 = vmatmul.lmr.bf16.gmra.16.mxu2 }
 0x12d   : > { %634 = vmatpush.msra.mxu3 %v237_v52 }
 0x12f   : > { %635 = vmatpush.msra.mxu3 %v235_v54 }
 0x131   : > { %636 = vmatpush.msra.mxu3 %v233_v55 }
 0x132   : > { %1044 = vmatmul.lmr.bf16.gmra.16.mxu1  ;;  %963 = vmatmul.msk.f32.vlgmr.msrb.gmra.mxu3 %vm378_vm1, %v372_v46  ;;  %v377_v11 = vpop.trf.xlu1 }
 0x133   : > { %979 = vmatmul.msk.f32.gmra.mxu0 %vm378_vm1, %v371_v29  ;;  %637 = vmatpush.msra.mxu3 %v231_v58 }
 0x134   : > { %1083 = vmatmul.lmr.bf16.gmra.16.mxu2 }
 0x135   : > { %638 = vmatpush.msra.mxu3 %v229_v59 }
 0x136   : > { %v581_v12 = vpop.f32.mrf.mxu2 }
 0x137   : > { %639 = vmatpush.msra.mxu3 %v227_v61 }
 0x139   : > { %640 = vmatpush.msra.mxu3 %v225_v63 }
 0x13a   : > { %1045 = vmatmul.lmr.bf16.gmra.16.mxu1  ;;  %964 = vmatmul.msk.f32.gmra.mxu3 %vm378_vm1, %v373_v57 }
 0x13b   : > { %980 = vmatmul.msk.f32.gmra.mxu0 %vm378_vm1, %v372_v46  ;;  %641 = vmatpush.msra.mxu3 %v223_v2 }
 0x13c   : > { %1084 = vmatmul.lmr.bf16.gmra.16.mxu2 }
 0x13d   : > { %642 = vmatpush.msra.mxu3 %v221_v4 }
 0x13e   : > { %v584_v14 = vpop.f32.mrf.mxu2 }
 0x13f   : > { %643 = vmatpush.msra.mxu3 %v219_v6 }
 0x141   : > { %644 = vmatpush.msra.mxu3 %v217_v8 }
 0x142   : > { %1046 = vmatmul.lmr.bf16.gmra.16.mxu1  ;;  %965 = vmatmul.msk.f32.gmra.mxu3 %vm378_vm1, %v374_v3 }
 0x143   : > { %981 = vmatmul.msk.f32.gmra.mxu0 %vm378_vm1, %v373_v57 }
 0x144   : > { %1085 = vmatmul.lmr.bf16.gmra.16.mxu2 }
 0x146   : > { %v587_v17 = vpop.f32.mrf.mxu2 }
 0x14a   : > { %1047 = vmatmul.lmr.bf16.gmra.16.mxu1  ;;  %966 = vmatmul.msk.f32.gmra.mxu3 %vm378_vm1, %v375_v9 }
 0x14b   : > { %982 = vmatmul.msk.f32.gmra.mxu0 %vm378_vm1, %v374_v3 }
 0x14c   : > { %1086 = vmatmul.lmr.bf16.gmra.16.mxu2 }
 0x14e   : > { %v590_v19 = vpop.f32.mrf.mxu2 }
 0x152   : > { %1048 = vmatmul.lmr.bf16.gmra.16.mxu1  ;;  %967 = vmatmul.msk.f32.gmra.mxu3 %vm378_vm1, %v376_v10 }
 0x153   : > { %983 = vmatmul.msk.f32.gmra.mxu0 %vm378_vm1, %v375_v9 }
 0x154   : > { %1087 = vmatmul.lmr.bf16.gmra.16.mxu2 }
 0x15a   : > { %1049 = vmatmul.lmr.bf16.gmra.16.mxu1  ;;  %968 = vmatmul.msk.f32.gmra.mxu3 %vm378_vm1, %v377_v11 }
 0x15b   : > { %984 = vmatmul.msk.f32.gmra.mxu0 %vm378_vm1, %v376_v10 }
 0x15c   : > { %1088 = vmatmul.lmr.bf16.gmra.16.mxu2 }
 0x162   : > { %1050 = vmatmul.lmr.bf16.gmra.16.mxu1  ;;  %645 = vmatmul.f32.vlgmr.msra.gmra.mxu3 %v1258_v33 }
 0x163   : > { %985 = vmatmul.msk.f32.gmra.mxu0 %vm378_vm1, %v377_v11 }
 0x164   : > { %1089 = vmatmul.lmr.bf16.gmra.16.mxu2 }
 0x167   : > { %v1468_v13 = vpop.f32.mrf.mxu1 }
 0x16a   : > { %1051 = vmatmul.lmr.bf16.gmra.16.mxu1  ;;  %648 = vmatmul.f32.gmra.mxu3 %v1261_v34  ;;  %v451_v34 = vpop.f32.mrf.mxu0 }
 0x16c   : > { %1090 = vmatmul.lmr.bf16.gmra.16.mxu2 }
 0x16f   : > { %v1471_v16 = vpop.f32.mrf.mxu1 }
 0x172   : > { %1052 = vmatmul.lmr.bf16.gmra.16.mxu1  ;;  %651 = vmatmul.f32.gmra.mxu3 %v1267_v37  ;;  %v593_v37 = vpop.f32.mrf.mxu2  ;;  %v454_v21 = vpop.f32.mrf.mxu0 }
 0x174   : > { %1091 = vmatmul.lmr.bf16.gmra.16.mxu2 }
 0x177   : > { %v1474_v18 = vpop.f32.mrf.mxu1 }
 0x17a   : > { %1053 = vmatmul.lmr.bf16.gmra.16.mxu1  ;;  %654 = vmatmul.f32.gmra.mxu3 %v1289_v44  ;;  %v596_v44 = vpop.f32.mrf.mxu2  ;;  %v457_v24 = vpop.f32.mrf.mxu0 }
 0x17c   : > { %1092 = vmatmul.lmr.bf16.gmra.16.mxu2 }
 0x17f   : > { %v1477_v33 = vpop.f32.mrf.mxu1 }
 0x182   : > { %1054 = vmatmul.lmr.bf16.gmra.16.mxu1  ;;  %657 = vmatmul.f32.gmra.mxu3 %v1309_v50  ;;  %v599_v25 = vpop.f32.mrf.mxu2  ;;  %v460_v27 = vpop.f32.mrf.mxu0 }
 0x184   : > { %1093 = vmatmul.lmr.bf16.gmra.16.mxu2 }
 0x187   : > { %v1480_v20 = vpop.f32.mrf.mxu1 }
 0x18a   : > { %1055 = vmatmul.lmr.bf16.gmra.16.mxu1  ;;  %660 = vmatmul.f32.gmra.mxu3 %v1328_v56  ;;  %v602_v31 = vpop.f32.mrf.mxu2  ;;  %v463_v38 = vpop.f32.mrf.mxu0 }
 0x18f   : > { %v1483_v23 = vpop.f32.mrf.mxu1 }
 0x192   : > { %1056 = vmatmul.lmr.bf16.gmra.16.mxu1  ;;  %663 = vmatmul.f32.gmra.mxu3 %v1347_v62  ;;  %v605_v43 = vpop.f32.mrf.mxu2  ;;  %v466_v45 = vpop.f32.mrf.mxu0 }
 0x197   : > { %v1486_v50 = vpop.f32.mrf.mxu1 }
 0x19a   : > { %1057 = vmatmul.lmr.bf16.gmra.16.mxu1  ;;  %666 = vmatmul.f32.gmra.mxu3 %v1355_v1  ;;  %v608_v49 = vpop.f32.mrf.mxu2  ;;  %v469_v53 = vpop.f32.mrf.mxu0 }
 0x19f   : > { %v516_v56 = vpop.f32.mrf.mxu1 }
 0x1a0   : > { %v517_v26 = vadd.f32 %v516_v56, %v451_v34 }
 0x1a2   : > { %v582_v62 = vadd.f32 %v581_v12, %v517_v26  ;;  %669 = vmatmul.f32.gmra.mxu3 %v1368_v7  ;;  %v711_v58 = vpop.f32.mrf.mxu2  ;;  %v776_v61 = vpop.f32.mrf.mxu0 }
 0x1a4   : > { %824 = vst [vmem:[%s1493_s14] sm:$0xff] %v582_v62 }
 0x1a5   : > { %v1497_v29 = vpop.f32.mrf.mxu3 }
 0x1a7   : > { %v519_v1 = vpop.f32.mrf.mxu1 }
 0x1a8   : > { %v520_v30 = vadd.f32 %v519_v1, %v454_v21 }
 0x1aa   : > { %v585_v35 = vadd.f32 %v584_v14, %v520_v30  ;;  %672 = vmatmul.f32.gmra.mxu3 %v1381_v15  ;;  %v714_v2 = vpop.f32.mrf.mxu2 }
 0x1ac   : > { %827 = vst [vmem:[%s1493_s14 + $0x10] sm:$0xff] %v585_v35 }
 0x1ad   : > { %v1501_v39 = vpop.f32.mrf.mxu3 }
 0x1af   : > { %v522_v40 = vpop.f32.mrf.mxu1 }
 0x1b0   : > { %v523_v42 = vadd.f32 %v522_v40, %v457_v24 }
 0x1b2   : > { %v588_v7 = vadd.f32 %v587_v17, %v523_v42  ;;  %675 = vmatmul.f32.gmra.mxu3 %v1392_v22  ;;  %v717_v9 = vpop.f32.mrf.mxu2 }
 0x1b4   : > { %829 = vst [vmem:[%s1493_s14 + $0x20] sm:$0xff] %v588_v7 }
 0x1b5   : > { %v1505_v46 = vpop.f32.mrf.mxu3 }
 0x1b7   : > { %v525_v47 = vpop.f32.mrf.mxu1 }
 0x1b8   : > { %v526_v15 = vadd.f32 %v525_v47, %v460_v27 }
 0x1ba   : > { %v591_v48 = vadd.f32 %v590_v19, %v526_v15  ;;  %678 = vmatmul.f32.gmra.mxu3 %v1403_v28  ;;  %v720_v17 = vpop.f32.mrf.mxu2 }
 0x1bc   : > { %831 = vst [vmem:[%s1493_s14 + $0x30] sm:$0xff] %v591_v48 }
 0x1bd   : > { %v1509_v52 = vpop.f32.mrf.mxu3 }
 0x1bf   : > { %v528_v54 = vpop.f32.mrf.mxu1 }
 0x1c0   : > { %v529_v22 = vadd.f32 %v528_v54, %v463_v38 }
 0x1c2   : > { %v594_v55 = vadd.f32 %v593_v37, %v529_v22  ;;  %681 = vmatmul.f32.gmra.mxu3 %v1411_v32  ;;  %v779_v32 = vpop.f32.mrf.mxu0 }
 0x1c4   : > { %833 = vst [vmem:[%s1493_s14 + $0x40] sm:$0xff] %v594_v55 }
 0x1c5   : > { %v1513_v57 = vpop.f32.mrf.mxu3 }
 0x1c7   : > { %v531_v59 = vpop.f32.mrf.mxu1 }
 0x1c8   : > { %v532_v60 = vadd.f32 %v531_v59, %v466_v45 }
 0x1ca   : > { %v597_v28 = vadd.f32 %v596_v44, %v532_v60  ;;  %684 = vmatmul.f32.gmra.mxu3 %v1417_v36  ;;  %v782_v10 = vpop.f32.mrf.mxu0 }
 0x1cc   : > { %835 = vst [vmem:[%s1493_s14 + $0x50] sm:$0xff] %v597_v28 }
 0x1cd   : > { %v1517_v63 = vpop.f32.mrf.mxu3 }
 0x1cf   : > { %v534_v0 = vpop.f32.mrf.mxu1 }
 0x1d0   : > { %v535_v3 = vadd.f32 %v534_v0, %v469_v53 }
 0x1d2   : > { %v600_v4 = vadd.f32 %v599_v25, %v535_v3  ;;  %687 = vmatmul.f32.gmra.mxu3 %v1425_v41 }
 0x1d4   : > { %837 = vst [vmem:[%s1493_s14 + $0x60] sm:$0xff] %v600_v4 }
 0x1d5   : > { %v1521_v5 = vpop.f32.mrf.mxu3 }
 0x1d7   : > { %v537_v6 = vpop.f32.mrf.mxu1 }
 0x1d8   : > { %v538_v8 = vadd.f32 %v537_v6, %v1468_v13  ;;  %v785_v13 = vpop.f32.mrf.mxu0 }
 0x1da   : > { %v603_v36 = vadd.f32 %v602_v31, %v538_v8  ;;  %690 = vmatmul.f32.gmra.mxu3 %v1435_v51 }
 0x1dc   : > { %839 = vst [vmem:[%s1493_s14 + $0x70] sm:$0xff] %v603_v36 }
 0x1dd   : > { %v1526_v11 = vpop.f32.mrf.mxu3 }
 0x1df   : > { %v540_v12 = vpop.f32.mrf.mxu1 }
 0x1e0   : > { %v541_v41 = vadd.f32 %v540_v12, %v1471_v16  ;;  %v723_v16 = vpop.f32.mrf.mxu2  ;;  %v788_v62 = vpop.f32.mrf.mxu0 }
 0x1e2   : > { %v606_v14 = vadd.f32 %v605_v43, %v541_v41 }
 0x1e4   : > { %841 = vst [vmem:[%s1493_s14 + $0x80] sm:$0xff] %v606_v14 }
 0x1e5   : > { %v646_v19 = vpop.f32.mrf.mxu3 }
 0x1e6   : > { %v712_v34 = vadd.f32 %v711_v58, %v646_v19 }
 0x1e7   : > { %v543_v37 = vpop.f32.mrf.mxu1 }
 0x1e8   : > { %v777_v51 = vadd.f32 %v776_v61, %v712_v34  ;;  %v544_v21 = vadd.f32 %v543_v37, %v1474_v18  ;;  %v726_v35 = vpop.f32.mrf.mxu2 }
 0x1ea   : > { %826 = vst.msk [vmem:[%s1493_s14 + $0x8] sm:$0xff] %vm825_vm2, %v777_v51  ;;  %v609_v44 = vadd.f32 %v608_v49, %v544_v21 }
 0x1ec   : > { %843 = vst [vmem:[%s1493_s14 + $0x90] sm:$0xff] %v609_v44 }
 0x1ed   : > { %v649_v24 = vpop.f32.mrf.mxu3 }
 0x1ee   : > { %v715_v25 = vadd.f32 %v714_v2, %v649_v24 }
 0x1ef   : > { %v546_v56 = vpop.f32.mrf.mxu1 }
 0x1f0   : > { %v780_v26 = vadd.f32 %v779_v32, %v715_v25  ;;  %v547_v27 = vadd.f32 %v546_v56, %v1477_v33  ;;  %v791_v33 = vpop.f32.mrf.mxu0  ;;  %v729_v15 = vpop.f32.mrf.mxu2 }
 0x1f2   : > { %828 = vst.msk [vmem:[%s1493_s14 + $0x18] sm:$0xff] %vm825_vm2, %v780_v26  ;;  %v612_v1 = vadd.f32 %v1505_v46, %v547_v27 }
 0x1f4   : > { %845 = vst [vmem:[%s1493_s14 + $0xa0] sm:$0xff] %v612_v1 }
 0x1f5   : > { %v652_v18 = vpop.f32.mrf.mxu3 }
 0x1f6   : > { %v718_v30 = vadd.f32 %v717_v9, %v652_v18 }
 0x1f7   : > { %v549_v31 = vpop.f32.mrf.mxu1 }
 0x1f8   : > { %v783_v38 = vadd.f32 %v782_v10, %v718_v30  ;;  %v550_v40 = vadd.f32 %v549_v31, %v1480_v20  ;;  %v794_v20 = vpop.f32.mrf.mxu0 }
 0x1fa   : > { %830 = vst.msk [vmem:[%s1493_s14 + $0x28] sm:$0xff] %vm825_vm2, %v783_v38  ;;  %v615_v42 = vadd.f32 %v1509_v52, %v550_v40 }
 0x1fc   : > { %847 = vst [vmem:[%s1493_s14 + $0xb0] sm:$0xff] %v615_v42 }
 0x1fd   : > { %v655_v7 = vpop.f32.mrf.mxu3 }
 0x1fe   : > { %v721_v43 = vadd.f32 %v720_v17, %v655_v7 }
 0x1ff   : > { %v552_v45 = vpop.f32.mrf.mxu1 }
 0x200   : > { %v786_v46 = vadd.f32 %v785_v13, %v721_v43  ;;  %v553_v47 = vadd.f32 %v552_v45, %v1483_v23  ;;  %v732_v23 = vpop.f32.mrf.mxu2 }
 0x202   : > { %832 = vst.msk [vmem:[%s1493_s14 + $0x38] sm:$0xff] %vm825_vm2, %v786_v46  ;;  %v618_v48 = vadd.f32 %v1513_v57, %v553_v47  ;;  %v797_v57 = vpop.f32.mrf.mxu0 }
 0x204   : > { %849 = vst [vmem:[%s1493_s14 + $0xc0] sm:$0xff] %v618_v48 }
 0x205   : > { %v658_v49 = vpop.f32.mrf.mxu3 }
 0x206   : > { %v724_v52 = vadd.f32 %v723_v16, %v658_v49 }
 0x207   : > { %v555_v53 = vpop.f32.mrf.mxu1 }
 0x208   : > { %v789_v54 = vadd.f32 %v788_v62, %v724_v52  ;;  %v556_v22 = vadd.f32 %v555_v53, %v1486_v50  ;;  %v735_v2 = vpop.f32.mrf.mxu2 }
 0x20a   : > { %834 = vst.msk [vmem:[%s1493_s14 + $0x48] sm:$0xff] %vm825_vm2, %v789_v54  ;;  %v621_v55 = vadd.f32 %v1517_v63, %v556_v22  ;;  %v800_v6 = vpop.f32.mrf.mxu0 }
 0x20c   : > { %851 = vst [vmem:[%s1493_s14 + $0xd0] sm:$0xff] %v621_v55 }
 0x20d   : > { %v661_v58 = vpop.f32.mrf.mxu3 }
 0x20e   : > { %v727_v59 = vadd.f32 %v726_v35, %v661_v58 }
 0x20f   : > { %v558_v60 = vpop.f32.mrf.mxu1 }
 0x210   : > { %v792_v61 = vadd.f32 %v791_v33, %v727_v59  ;;  %v559_v28 = vadd.f32 %v558_v60, %v1497_v29 }
 0x212   : > { %836 = vst.msk [vmem:[%s1493_s14 + $0x58] sm:$0xff] %vm825_vm2, %v792_v61  ;;  %v624_v0 = vadd.f32 %v1521_v5, %v559_v28  ;;  %v738_v5 = vpop.f32.mrf.mxu2  ;;  %v803_v10 = vpop.f32.mrf.mxu0 }
 0x214   : > { %853 = vst [vmem:[%s1493_s14 + $0xe0] sm:$0xff] %v624_v0 }
 0x215   : > { %v664_v50 = vpop.f32.mrf.mxu3 }
 0x216   : > { %v730_v63 = vadd.f32 %v729_v15, %v664_v50 }
 0x217   : > { %v561_v3 = vpop.f32.mrf.mxu1 }
 0x218   : > { %v795_v4 = vadd.f32 %v794_v20, %v730_v63  ;;  %v562_v32 = vadd.f32 %v561_v3, %v1501_v39 }
 0x21a   : > { %838 = vst.msk [vmem:[%s1493_s14 + $0x68] sm:$0xff] %vm825_vm2, %v795_v4  ;;  %v627_v8 = vadd.f32 %v1526_v11, %v562_v32  ;;  %v741_v17 = vpop.f32.mrf.mxu2  ;;  %v806_v39 = vpop.f32.mrf.mxu0 }
 0x21c   : > { %855 = vst [vmem:[%s1493_s14 + $0xf0] sm:$0xff] %v627_v8 }
 0x21d   : > { %v667_v29 = vpop.f32.mrf.mxu3 }
 0x21e   : > { %v733_v9 = vadd.f32 %v732_v23, %v667_v29 }
 0x220   : > { %v798_v36 = vadd.f32 %v797_v57, %v733_v9 }
 0x222   : > { %840 = vst.msk [vmem:[%s1493_s14 + $0x78] sm:$0xff] %vm825_vm2, %v798_v36  ;;  %v744_v13 = vpop.f32.mrf.mxu2  ;;  %v809_v21 = vpop.f32.mrf.mxu0 }
 0x225   : > { %v670_v12 = vpop.f32.mrf.mxu3 }
 0x226   : > { %v736_v41 = vadd.f32 %v735_v2, %v670_v12 }
 0x228   : > { %v801_v14 = vadd.f32 %v800_v6, %v736_v41 }
 0x22a   : > { %842 = vst.msk [vmem:[%s1493_s14 + $0x88] sm:$0xff] %vm825_vm2, %v801_v14  ;;  %v747_v16 = vpop.f32.mrf.mxu2  ;;  %v812_v26 = vpop.f32.mrf.mxu0 }
 0x22d   : > { %v673_v19 = vpop.f32.mrf.mxu3 }
 0x22e   : > { %v739_v11 = vadd.f32 %v738_v5, %v673_v19 }
 0x230   : > { %v804_v34 = vadd.f32 %v803_v10, %v739_v11 }
 0x232   : > { %844 = vst.msk [vmem:[%s1493_s14 + $0x98] sm:$0xff] %vm825_vm2, %v804_v34  ;;  %v750_v1 = vpop.f32.mrf.mxu2  ;;  %v815_v30 = vpop.f32.mrf.mxu0 }
 0x235   : > { %v676_v37 = vpop.f32.mrf.mxu3 }
 0x236   : > { %v742_v51 = vadd.f32 %v741_v17, %v676_v37 }
 0x238   : > { %v807_v44 = vadd.f32 %v806_v39, %v742_v51 }
 0x23a   : > { %846 = vst.msk [vmem:[%s1493_s14 + $0xa8] sm:$0xff] %vm825_vm2, %v807_v44  ;;  %v753_v40 = vpop.f32.mrf.mxu2  ;;  %v818_v42 = vpop.f32.mrf.mxu0 }
 0x23d   : > { %v679_v24 = vpop.f32.mrf.mxu3 }
 0x23e   : > { %v745_v25 = vadd.f32 %v744_v13, %v679_v24 }
 0x240   : > { %v810_v56 = vadd.f32 %v809_v21, %v745_v25 }
 0x242   : > { %848 = vst.msk [vmem:[%s1493_s14 + $0xb8] sm:$0xff] %vm825_vm2, %v810_v56  ;;  %v756_v45 = vpop.f32.mrf.mxu2  ;;  %v821_v15 = vpop.f32.mrf.mxu0 }
 0x245   : > { %v682_v27 = vpop.f32.mrf.mxu3 }
 0x246   : > { %v748_v62 = vadd.f32 %v747_v16, %v682_v27 }
 0x248   : > { %v813_v18 = vadd.f32 %v812_v26, %v748_v62 }
 0x24a   : > { %850 = vst.msk [vmem:[%s1493_s14 + $0xc8] sm:$0xff] %vm825_vm2, %v813_v18 }
 0x24d   : > { %v685_v31 = vpop.f32.mrf.mxu3 }
 0x24e   : > { %v751_v35 = vadd.f32 %v750_v1, %v685_v31 }
 0x250   : > { %v816_v38 = vadd.f32 %v815_v30, %v751_v35 }
 0x252   : > { %852 = vst.msk [vmem:[%s1493_s14 + $0xd8] sm:$0xff] %vm825_vm2, %v816_v38 }
 0x255   : > { %v688_v33 = vpop.f32.mrf.mxu3 }
 0x256   : > { %v754_v7 = vadd.f32 %v753_v40, %v688_v33 }
 0x258   : > { %v819_v43 = vadd.f32 %v818_v42, %v754_v7 }
 0x25a   : > { %854 = vst.msk [vmem:[%s1493_s14 + $0xe8] sm:$0xff] %vm825_vm2, %v819_v43 }
 0x25d   : > { %v691_v46 = vpop.f32.mrf.mxu3 }
 0x25e   : > { %v757_v47 = vadd.f32 %v756_v45, %v691_v46 }
 0x260   : > { %v822_v48 = vadd.f32 %v821_v15, %v757_v47 }
 0x262   : > { %856 = vst.msk [vmem:[%s1493_s14 + $0xf8] sm:$0xff] %vm825_vm2, %v822_v48 }
 0x263 PF: > { %s12_s11 = sadd.s32 1, %s1142_s11   ;;  %s1594_s9 = smov %s1138_s10 }
 0x264   : > { %p9_p5 = scmp.ge.s32.totalorder %s12_s11, 4   ;;  %s1595_s10 = smov %s1597_s12 }
 0x266   :  { %11 = sbr.rel (!%p9_p5) target bundleno = 2 (0x2), region = 58 }

</bundles_post_ra>
